<compile_context>
chip_gen: v7x
topology: tpu7x:2x2x1
jax: 0.10.0
libtpu: 0.0.40
codegen_flags: <defaults>
</compile_context>

<pallas_src>
import math

import jax
import jax.numpy as jnp
from jax.experimental import pallas as pl
from jax.experimental.pallas import tpu as pltpu

CHANNELS = 1
IMG_SIZE = 28
IN_FEATURES = CHANNELS * IMG_SIZE * IMG_SIZE  # 784
H1 = 512
H2 = 256
OUT = 1
MAX_TB = 1024  # batch-tile cap (sweepable via block_batch)


def _round_up(n, m):
    return ((n + m - 1) // m) * m


def _sigmoid(x):
    # exp on the EUP, approx reciprocal keeps the divide off the VALU slots.
    return pl.reciprocal(1.0 + jnp.exp(-x), approx=True)


def discriminator_kernel(x_ref, w1_ref, b1_ref, w2_ref, b2_ref, w3_ref, b3_ref,
                         o_ref):
    # x tile arrives as f32 straight from HBM; cast to bf16 on the VPU (which
    # has slack) instead of paying an extra HBM round trip in the wrapper.
    x = x_ref[...].astype(jnp.bfloat16)

    # Layer 1: (TB, 784) @ (784, 512) -> f32 accumulate on the MXU.
    h1 = jnp.dot(x, w1_ref[...], preferred_element_type=jnp.float32)
    h1 = h1 + b1_ref[...]
    # LeakyReLU(0.2) = max(x, 0.2*x): mul+max instead of cmp+select+mul.
    h1 = jnp.maximum(h1, 0.2 * h1).astype(jnp.bfloat16)

    # Layer 2: (TB, 512) @ (512, 256) -> f32 accumulate, bias + sigmoid in f32.
    h2 = jnp.dot(h1, w2_ref[...], preferred_element_type=jnp.float32)
    h2 = _sigmoid(h2 + b2_ref[...])

    # Layer 3 (256 -> 1): lane-sparse matmul done as a VPU multiply + lane
    # reduction (XLU), keeping the MXU free of a near-empty pass.
    h3 = jnp.sum(h2 * w3_ref[...], axis=-1, keepdims=True) + b3_ref[...]
    o_ref[...] = _sigmoid(h3).astype(o_ref.dtype)


def prepare_params(params):
    """One-time prep: transpose to (in, out) and cast matmul weights to bf16."""
    w1, b1, w2, b2, w3, b3 = params
    w1t = w1.T.astype(jnp.bfloat16)               # (784, 512) -- no K padding
    w2t = w2.T.astype(jnp.bfloat16)               # (512, 256)
    w3r = w3.reshape(1, H2).astype(jnp.float32)   # used on the VPU, keep f32
    b1r = b1.reshape(1, H1).astype(jnp.float32)
    b2r = b2.reshape(1, H2).astype(jnp.float32)
    b3r = b3.reshape(1, 1).astype(jnp.float32)
    return w1t, b1r, w2t, b2r, w3r, b3r


def _pick_tile(batch):
    """Batch-tile size: small tiles for tiny batches, >=2 steps for megacore."""
    if batch < 128:
        return _round_up(max(batch, 1), 8)        # sublane granularity is 8
    b128 = _round_up(batch, 128)
    if b128 < 256:
        return 128
    # At least two grid steps so the "parallel" axis shards across both v7x
    # TensorCores; capped at MAX_TB rows (v6e sweet spot, fits v7x VMEM).
    return max(128, min(MAX_TB, (b128 // 2) // 128 * 128))


def discriminator_forward(x, prep, *, block_batch=None):
    """x: (B, 1, 28, 28) float32 NCHW. Returns (B, 1) float32."""
    w1t, b1r, w2t, b2r, w3r, b3r = prep
    batch = x.shape[0]

    # Free reshape (no data movement); no pad/cast here -> the kernel's own
    # pipelined DMA is the only HBM read of x.
    x_flat = x.reshape(batch, -1)
    assert x_flat.shape[1] == IN_FEATURES

    tb = block_batch or _pick_tile(batch)
    b_pad = _round_up(batch, tb)
    if b_pad != batch:
        # Only non-tile-multiple batches pay this (cheap) row pad.
        x_flat = jnp.pad(x_flat, ((0, b_pad - batch), (0, 0)))

    flops = 2 * b_pad * (IN_FEATURES * H1 + H1 * H2 + H2 * OUT)
    transcendentals = b_pad * (H2 + OUT)          # exp in the two sigmoids
    bytes_accessed = (b_pad * IN_FEATURES * 4 + int(w1t.size) * 2
                      + int(w2t.size) * 2 + (H1 + 2 * H2 + 1) * 4
                      + b_pad * OUT * 4)

    out = pl.pallas_call(
        discriminator_kernel,
        out_shape=jax.ShapeDtypeStruct((b_pad, OUT), jnp.float32),
        grid=(b_pad // tb,),
        in_specs=[
            pl.BlockSpec((tb, IN_FEATURES), lambda i: (i, 0)),   # x tile (pipelined)
            pl.BlockSpec((IN_FEATURES, H1), lambda i: (0, 0)),   # W1^T (resident)
            pl.BlockSpec((1, H1), lambda i: (0, 0)),             # b1
            pl.BlockSpec((H1, H2), lambda i: (0, 0)),            # W2^T (resident)
            pl.BlockSpec((1, H2), lambda i: (0, 0)),             # b2
            pl.BlockSpec((1, H2), lambda i: (0, 0)),             # W3 row
            pl.BlockSpec((1, 1), lambda i: (0, 0)),              # b3
        ],
        out_specs=pl.BlockSpec((tb, OUT), lambda i: (i, 0)),
        compiler_params=pltpu.CompilerParams(
            dimension_semantics=("parallel",)),
        cost_estimate=pl.CostEstimate(
            flops=flops, transcendentals=transcendentals,
            bytes_accessed=bytes_accessed),
    )(x_flat, w1t, b1r, w2t, b2r, w3r, b3r)
    return out[:batch]


def init_params(key):
    """PyTorch nn.Linear default init: U(-1/sqrt(fan_in), 1/sqrt(fan_in))."""
    keys = jax.random.split(key, 6)

    def linear(kw, kb, fan_in, fan_out):
        bound = 1.0 / math.sqrt(fan_in)
        w = jax.random.uniform(kw, (fan_out, fan_in), jnp.float32, -bound, bound)
        b = jax.random.uniform(kb, (fan_out,), jnp.float32, -bound, bound)
        return w, b

    w1, b1 = linear(keys[0], keys[1], IN_FEATURES, H1)
    w2, b2 = linear(keys[2], keys[3], H1, H2)
    w3, b3 = linear(keys[4], keys[5], H2, OUT)
    return w1, b1, w2, b2, w3, b3


def reference_forward(x, params):
    """Plain-JAX f32 reference mirroring the PyTorch module."""
    w1, b1, w2, b2, w3, b3 = params
    out = x.reshape(x.shape[0], -1)
    out = out @ w1.T + b1
    out = jnp.where(out > 0, out, 0.2 * out)
    out = out @ w2.T + b2
    out = jax.nn.sigmoid(out)
    out = out @ w3.T + b3
    return jax.nn.sigmoid(out)


if __name__ == "__main__":
    key = jax.random.PRNGKey(0)
    k_params, k_x = jax.random.split(key)

    params = init_params(k_params)
    prep = prepare_params(params)
    x = jax.random.normal(k_x, (2, CHANNELS, IMG_SIZE, IMG_SIZE), jnp.float32)

    out = discriminator_forward(x, prep)
    out = jax.block_until_ready(out)

    ref = reference_forward(x, params)
    assert out.shape == (2, 1), out.shape
    # bf16 matmul operands (f32 accumulation) + approx reciprocal => loosen the
    # tolerance vs the pure-f32 reference.
    assert jnp.allclose(out, ref, atol=1e-2, rtol=1e-2), (out, ref)

    print("KERNEL_OK")
</pallas_src>

<mosaic_0001>
module attributes {stable_mosaic.version = 11 : i64} {
  func.func @discriminator_kernel(%arg0: i32, %arg1: memref<8x784xf32, #tpu.memory_space<vmem>>, %arg2: memref<784x512xbf16, #tpu.memory_space<vmem>>, %arg3: memref<1x512xf32, #tpu.memory_space<vmem>>, %arg4: memref<512x256xbf16, #tpu.memory_space<vmem>>, %arg5: memref<1x256xf32, #tpu.memory_space<vmem>>, %arg6: memref<1x256xf32, #tpu.memory_space<vmem>>, %arg7: memref<1x1xf32, #tpu.memory_space<vmem>>, %arg8: memref<8x1xf32, #tpu.memory_space<vmem>>) attributes {dimension_semantics = [#tpu.dimension_semantics<parallel>], iteration_bounds = array<i64: 1>, scalar_prefetch = 0 : i64, scratch_operands = 0 : i64, tpu.core_type = #tpu.core_type<tc>, window_params = [{transform_indices = @transform_0, window_bounds = array<i64: 8, 784>}, {pipeline_mode = #tpu.pipeline_mode<synchronous>, transform_indices = @transform_1, window_bounds = array<i64: 784, 512>}, {pipeline_mode = #tpu.pipeline_mode<synchronous>, transform_indices = @transform_2, window_bounds = array<i64: 1, 512>}, {pipeline_mode = #tpu.pipeline_mode<synchronous>, transform_indices = @transform_3, window_bounds = array<i64: 512, 256>}, {pipeline_mode = #tpu.pipeline_mode<synchronous>, transform_indices = @transform_4, window_bounds = array<i64: 1, 256>}, {pipeline_mode = #tpu.pipeline_mode<synchronous>, transform_indices = @transform_5, window_bounds = array<i64: 1, 256>}, {pipeline_mode = #tpu.pipeline_mode<synchronous>, transform_indices = @transform_6, window_bounds = array<i64: 1, 1>}, {transform_indices = @transform_7, window_bounds = array<i64: 8, 1>}]} {
    %c0 = arith.constant 0 : index
    %c0_0 = arith.constant 0 : index
    %0 = vector.load %arg1[%c0, %c0_0] : memref<8x784xf32, #tpu.memory_space<vmem>>, vector<8x784xf32>
    %1 = arith.truncf %0 : vector<8x784xf32> to vector<8x784xbf16>
    %c0_1 = arith.constant 0 : index
    %c0_2 = arith.constant 0 : index
    %2 = vector.load %arg2[%c0_1, %c0_2] : memref<784x512xbf16, #tpu.memory_space<vmem>>, vector<784x512xbf16>
    %cst = arith.constant dense<0.000000e+00> : vector<8x512xf32>
    %3 = tpu.matmul %1, %2, %cst {dimension_numbers = #tpu.dot_dimension_numbers<[1], [0], [0], [1], [0, 0, 1, 1], [], []>} : vector<8x784xbf16>, vector<784x512xbf16>, vector<8x512xf32> -> vector<8x512xf32>
    %c0_3 = arith.constant 0 : index
    %c0_4 = arith.constant 0 : index
    %4 = vector.load %arg3[%c0_3, %c0_4] : memref<1x512xf32, #tpu.memory_space<vmem>>, vector<1x512xf32>
    %5 = vector.broadcast %4 : vector<1x512xf32> to vector<8x512xf32>
    %6 = arith.addf %3, %5 : vector<8x512xf32>
    %cst_5 = arith.constant 2.000000e-01 : f32
    %7 = vector.broadcast %cst_5 : f32 to vector<8x512xf32>
    %8 = arith.mulf %7, %6 : vector<8x512xf32>
    %9 = arith.maximumf %6, %8 : vector<8x512xf32>
    %10 = arith.truncf %9 : vector<8x512xf32> to vector<8x512xbf16>
    %c0_6 = arith.constant 0 : index
    %c0_7 = arith.constant 0 : index
    %11 = vector.load %arg4[%c0_6, %c0_7] : memref<512x256xbf16, #tpu.memory_space<vmem>>, vector<512x256xbf16>
    %cst_8 = arith.constant dense<0.000000e+00> : vector<8x256xf32>
    %12 = tpu.matmul %10, %11, %cst_8 {dimension_numbers = #tpu.dot_dimension_numbers<[1], [0], [0], [1], [0, 0, 1, 1], [], []>} : vector<8x512xbf16>, vector<512x256xbf16>, vector<8x256xf32> -> vector<8x256xf32>
    %c0_9 = arith.constant 0 : index
    %c0_10 = arith.constant 0 : index
    %13 = vector.load %arg5[%c0_9, %c0_10] : memref<1x256xf32, #tpu.memory_space<vmem>>, vector<1x256xf32>
    %14 = vector.broadcast %13 : vector<1x256xf32> to vector<8x256xf32>
    %15 = arith.addf %12, %14 : vector<8x256xf32>
    %cst_11 = arith.constant 0.000000e+00 : f32
    %16 = vector.broadcast %cst_11 : f32 to vector<8x256xf32>
    %17 = arith.subf %16, %15 : vector<8x256xf32>
    %18 = math.exp %17 : vector<8x256xf32>
    %cst_12 = arith.constant 1.000000e+00 : f32
    %19 = vector.broadcast %cst_12 : f32 to vector<8x256xf32>
    %20 = arith.addf %19, %18 : vector<8x256xf32>
    %21 = tpu.reciprocal %20 {approx = true} : vector<8x256xf32> -> vector<8x256xf32>
    %c0_13 = arith.constant 0 : index
    %c0_14 = arith.constant 0 : index
    %22 = vector.load %arg6[%c0_13, %c0_14] : memref<1x256xf32, #tpu.memory_space<vmem>>, vector<1x256xf32>
    %23 = vector.broadcast %22 : vector<1x256xf32> to vector<8x256xf32>
    %24 = arith.mulf %21, %23 : vector<8x256xf32>
    %cst_15 = arith.constant dense<0.000000e+00> : vector<8xf32>
    %25 = vector.multi_reduction <add>, %24, %cst_15 [1] : vector<8x256xf32> to vector<8xf32>
    %26 = vector.shape_cast %25 : vector<8xf32> to vector<8x1xf32>
    %c0_16 = arith.constant 0 : index
    %c0_17 = arith.constant 0 : index
    %27 = vector.load %arg7[%c0_16, %c0_17] : memref<1x1xf32, #tpu.memory_space<vmem>>, vector<1x1xf32>
    %28 = vector.broadcast %27 : vector<1x1xf32> to vector<8x1xf32>
    %29 = arith.addf %26, %28 : vector<8x1xf32>
    %cst_18 = arith.constant 0.000000e+00 : f32
    %30 = vector.broadcast %cst_18 : f32 to vector<8x1xf32>
    %31 = arith.subf %30, %29 : vector<8x1xf32>
    %32 = math.exp %31 : vector<8x1xf32>
    %cst_19 = arith.constant 1.000000e+00 : f32
    %33 = vector.broadcast %cst_19 : f32 to vector<8x1xf32>
    %34 = arith.addf %33, %32 : vector<8x1xf32>
    %35 = tpu.reciprocal %34 {approx = true} : vector<8x1xf32> -> vector<8x1xf32>
    %c0_20 = arith.constant 0 : index
    %c0_21 = arith.constant 0 : index
    %36 = vector.load %arg8[%c0_20, %c0_21] : memref<8x1xf32, #tpu.memory_space<vmem>>, vector<8x1xf32>
    tpu.vector_store %arg8[%c0_20, %c0_21], %35 {strides = array<i32>} : memref<8x1xf32, #tpu.memory_space<vmem>>, vector<8x1xf32>,
    return
  }
  func.func @transform_0(%arg0: i32) -> (i32, i32) {
    %c0_i32 = arith.constant 0 : i32
    %c0_i32_0 = arith.constant 0 : i32
    return %arg0, %c0_i32 : i32, i32
  }
  func.func @transform_1(%arg0: i32) -> (i32, i32) {
    %c0_i32 = arith.constant 0 : i32
    %c0_i32_0 = arith.constant 0 : i32
    %c0_i32_1 = arith.constant 0 : i32
    return %c0_i32, %c0_i32_0 : i32, i32
  }
  func.func @transform_2(%arg0: i32) -> (i32, i32) {
    %c0_i32 = arith.constant 0 : i32
    %c0_i32_0 = arith.constant 0 : i32
    %c0_i32_1 = arith.constant 0 : i32
    return %c0_i32, %c0_i32_0 : i32, i32
  }
  func.func @transform_3(%arg0: i32) -> (i32, i32) {
    %c0_i32 = arith.constant 0 : i32
    %c0_i32_0 = arith.constant 0 : i32
    %c0_i32_1 = arith.constant 0 : i32
    return %c0_i32, %c0_i32_0 : i32, i32
  }
  func.func @transform_4(%arg0: i32) -> (i32, i32) {
    %c0_i32 = arith.constant 0 : i32
    %c0_i32_0 = arith.constant 0 : i32
    %c0_i32_1 = arith.constant 0 : i32
    return %c0_i32, %c0_i32_0 : i32, i32
  }
  func.func @transform_5(%arg0: i32) -> (i32, i32) {
    %c0_i32 = arith.constant 0 : i32
    %c0_i32_0 = arith.constant 0 : i32
    %c0_i32_1 = arith.constant 0 : i32
    return %c0_i32, %c0_i32_0 : i32, i32
  }
  func.func @transform_6(%arg0: i32) -> (i32, i32) {
    %c0_i32 = arith.constant 0 : i32
    %c0_i32_0 = arith.constant 0 : i32
    %c0_i32_1 = arith.constant 0 : i32
    return %c0_i32, %c0_i32_0 : i32, i32
  }
  func.func @transform_7(%arg0: i32) -> (i32, i32) {
    %c0_i32 = arith.constant 0 : i32
    %c0_i32_0 = arith.constant 0 : i32
    return %arg0, %c0_i32 : i32, i32
  }
}

</mosaic_0001>

<bundles_post_ra>
// kernel: tpu_custom_call.1
= control target key start
LH: loop header
LB: loop body
LE: loop exit
PB: predicated region body
PF: predicated region fallthrough
CT: control target
= control target key end

     0   :  { %s3078_s0 = inlined_call_operand.hbm [shape: f32[8,784], index: 0, kind: input, shape index: {}]   ;;  %s3079_s1 = inlined_call_operand.hbm [shape: bf16[784,512], index: 1, kind: input, shape index: {}]   ;;  %s3080_s2 = inlined_call_operand.vmem [shape: f32[1,512], index: 2, kind: input, shape index: {}]   ;;  %s3081_s3 = inlined_call_operand.hbm [shape: bf16[512,256], index: 3, kind: input, shape index: {}]   ;;  %s3082_s4 = inlined_call_operand.vmem [shape: f32[1,256], index: 4, kind: input, shape index: {}]   ;;  %s3083_s5 = inlined_call_operand.vmem [shape: f32[1,256], index: 5, kind: input, shape index: {}]   ;;  %s3084_s6 = inlined_call_operand.<no memory space> [shape: f32[1,1], index: 6, kind: input, shape index: {}]   ;;  %s3085_s7 = inlined_call_operand.vmem [shape: f32[8,1], index: 7, kind: output, shape index: {}]  }
   0x1   :  { %v12_v0 = vstv %s3084_s6 }
   0x2   :  { %13 = vst [vmem:[#allocation2] sm:$0x1] %v12_v0 }
   0x3   :  { %14 = vsyncpa [#allocation4], 0 }
   0x4   :  { %15 = vsyncpa [#allocation6], 0  ;;  %s2925_s26 = smov [#allocation5]   ;;  %s2855_s30 = scalar_lea.hbm %s3079_s1, 25088 }
   0x5   :  { %s31_s27 = sshll.u32 %s2925_s26, 4  ;;  %p2856_p0 = scmp.ne.s32.totalorder %s3079_s1, %s2855_s30  ;;  %s32_s27 = int_to_ptr.vmem [resolvable:$true] %s31_s27 }
   0x6   :  { %p2859_p1 = scmp.lt.u32.totalorder %s2855_s30, %s3079_s1 }
   0x8   :  { %p2861_p2 = pnand %p2859_p1, %p2856_p0 }
   0xa   :  { %2864 = shalt.err (!%p2861_p2)
}
   0xb   :  { %s2865_s6 = scalar_lea.vmem %s32_s27, 25088  ;;  %p2870_p4 = scmp.lt.s32.totalorder %s32_s27, %s32_s27 }
   0xc   :  { %p2866_p3 = scmp.ne.s32.totalorder %s32_s27, %s2865_s6  ;;  %p2871_p5 = scmp.lt.s32.totalorder %s2865_s6, %s2865_s6 }
   0xe   :  { %p2872_p6 = por %p2871_p5, %p2870_p4 }
  0x10   :  { %p2873_p7 = pnand %p2872_p6, %p2866_p3 }
  0x12   :  { %2876 = shalt.err (!%p2873_p7)
}
  0x13   :  { %s2926_s12 = smov 256   ;;  %s2927_s13 = smov 16  }
  0x14   :  { %37 = dma.hbm_to_vmem [thread:$0]  %s3079_s1, 25088, %s32_s27, [#allocation6], %s2926_s12, %s2926_s12, %s2927_s13  }
  0x15   :  { %s2928_s16 = smov [#allocation3]   ;;  %s2929_s18 = smov [#allocation7]  }
  0x16   :  { %s22_s17 = sshll.u32 %s2928_s16, 4  ;;  %s45_s19 = sshll.u32 %s2929_s18, 4  ;;  %s23_s17 = int_to_ptr.vmem [resolvable:$true] %s22_s17  ;;  %s46_s19 = int_to_ptr.vmem [resolvable:$true] %s45_s19 }
  0x17   :  { %s2877_s22 = scalar_lea.hbm %s3078_s0, 896 }
  0x18   :  { %p2878_p8 = scmp.ne.s32.totalorder %s3078_s0, %s2877_s22  ;;  %p2881_p9 = scmp.lt.u32.totalorder %s2877_s22, %s3078_s0 }
  0x1a   :  { %p2883_p10 = pnand %p2881_p9, %p2878_p8 }
  0x1c   :  { %2886 = shalt.err (!%p2883_p10)
}
  0x1d   :  { %s2887_s1 = scalar_lea.vmem %s23_s17, 896  ;;  %p2892_p12 = scmp.lt.s32.totalorder %s23_s17, %s23_s17 }
  0x1e   :  { %p2888_p11 = scmp.ne.s32.totalorder %s23_s17, %s2887_s1  ;;  %p2893_p13 = scmp.lt.s32.totalorder %s2887_s1, %s2887_s1 }
  0x20   :  { %p2894_p0 = por %p2893_p13, %p2892_p12 }
  0x22   :  { %p2895_p1 = pnand %p2894_p0, %p2888_p11 }
  0x24   :  { %2898 = shalt.err (!%p2895_p1)
}
  0x25   :  { %25 = dma.hbm_to_vmem [thread:$0]  %s3078_s0, 896, %s23_s17, [#allocation4]  }
  0x26   :  { %s2899_s8 = scalar_lea.hbm %s3081_s3, 8192 }
  0x27   :  { %p2900_p2 = scmp.ne.s32.totalorder %s3081_s3, %s2899_s8  ;;  %p2903_p3 = scmp.lt.u32.totalorder %s2899_s8, %s3081_s3 }
  0x29   :  { %p2905_p4 = pnand %p2903_p3, %p2900_p2 }
  0x2b   :  { %2908 = shalt.err (!%p2905_p4)
}
  0x2c   :  { %s2909_s12 = scalar_lea.vmem %s46_s19, 8192  ;;  %p2914_p6 = scmp.lt.s32.totalorder %s46_s19, %s46_s19 }
  0x2d   :  { %p2910_p5 = scmp.ne.s32.totalorder %s46_s19, %s2909_s12  ;;  %p2915_p7 = scmp.lt.s32.totalorder %s2909_s12, %s2909_s12 }
  0x2f   :  { %p2916_p8 = por %p2915_p7, %p2914_p6 }
  0x31   :  { %p2917_p9 = pnand %p2916_p8, %p2910_p5 }
  0x33   :  { %2920 = shalt.err (!%p2917_p9)
}
  0x34   :  { %s2930_s0 = smov 128   ;;  %s2931_s13 = smov 8  }
  0x35   :  { %51 = dma.hbm_to_vmem [thread:$0]  %s3081_s3, 8192, %s46_s19, [#allocation6], %s2930_s0, %s2930_s0, %s2931_s13  }
  0x36   :  { %2921 = dma.done.wait [#allocation4], 896  }
  0x37   :  { %2922 = vsyncadd [#allocation4], 4294966400 }
  0x38   :  { %2923 = dma.done.wait [#allocation6], 33280  }
  0x39   :  { %2924 = vsyncadd [#allocation6], 4294934016  ;;  %v2453_v1 = vld [vmem:[#allocation5 + $0x4] ss:$16 sps:$4 sm:$0xff]   ;;  %v2457_v3 = vld [vmem:[#allocation5] ss:$16 sps:$4 sm:$0xff]  }
  0x3a   :  { %v2455_v2 = vld [vmem:[#allocation5 + $0x204] ss:$16 sps:$4 sm:$0xff]   ;;  %1284 = vmatprep.subr.bf16.mxu1 %v2453_v1  ;;  %v2458_v4 = vld [vmem:[#allocation5 + $0x200] ss:$16 sps:$4 sm:$0xff]   ;;  %vm1280_vm0 = vcmask 130048   ;;  %vm2142_vm1 = vcmask 7168  }
  0x3b   :  { %1325 = vmatprep.subr.bf16.mxu0 %v2455_v2  ;;  %v2459_v5 = vld [vmem:[#allocation5 + $0x24] ss:$16 sps:$4 sm:$0xff]   ;;  %1285 = vmatpush1.bf16.msra.mxu1 %v2457_v3  ;;  %v2463_v7 = vld [vmem:[#allocation5 + $0x20] ss:$16 sps:$4 sm:$0xff]  }
  0x3c   :  { %1326 = vmatpush1.bf16.msra.mxu0 %v2458_v4  ;;  %v2461_v6 = vld [vmem:[#allocation5 + $0x224] ss:$16 sps:$4 sm:$0xff]   ;;  %1286 = vmatprep.subr.bf16.mxu1 %v2459_v5  ;;  %v2464_v8 = vld [vmem:[#allocation5 + $0x220] ss:$16 sps:$4 sm:$0xff]   ;;  %v68_v5 = vld [vmem:[#allocation3] sm:$0xff] }
  0x3d   :  { %1327 = vmatprep.subr.bf16.mxu0 %v2461_v6  ;;  %v2465_v9 = vld [vmem:[#allocation5 + $0x44] ss:$16 sps:$4 sm:$0xff]   ;;  %v2469_v11 = vld [vmem:[#allocation5 + $0x40] ss:$16 sps:$4 sm:$0xff]  }
  0x3e   :  { %v2467_v10 = vld [vmem:[#allocation5 + $0x244] ss:$16 sps:$4 sm:$0xff]   ;;  %v2470_v12 = vld [vmem:[#allocation5 + $0x240] ss:$16 sps:$4 sm:$0xff]  }
  0x3f   :  { %1287 = vmatpush1.bf16.msra.mxu1 %v2463_v7  ;;  %v2471_v13 = vld [vmem:[#allocation5 + $0x64] ss:$16 sps:$4 sm:$0xff]   ;;  %v2475_v15 = vld [vmem:[#allocation5 + $0x60] ss:$16 sps:$4 sm:$0xff]   ;;  %v70_v7 = vld [vmem:[#allocation3 + $0x10] sm:$0xff] }
  0x40   :  { %1328 = vmatpush1.bf16.msra.mxu0 %v2464_v8  ;;  %1288 = vmatprep.subr.bf16.mxu1 %v2465_v9  ;;  %v2473_v14 = vld [vmem:[#allocation5 + $0x264] ss:$16 sps:$4 sm:$0xff]   ;;  %v2476_v16 = vld [vmem:[#allocation5 + $0x260] ss:$16 sps:$4 sm:$0xff]   ;;  %v2554_v8 = vld [vmem:[#allocation5 + $0xc] ss:$16 sps:$4 sm:$0xff]   ;;  %v3018_v9 = vpack.c.bf16 %v68_v5, %v68_v5 }
  0x41   :  { %1329 = vmatprep.subr.bf16.mxu0 %v2467_v10  ;;  %v2477_v17 = vld [vmem:[#allocation5 + $0x84] ss:$16 sps:$4 sm:$0xff]   ;;  %v2481_v19 = vld [vmem:[#allocation5 + $0x80] ss:$16 sps:$4 sm:$0xff]   ;;  %v2638_v5 = vld [vmem:[#allocation5 + $0x1cc] ss:$16 sps:$4 sm:$0xff]  }
  0x42   :  { %v2479_v18 = vld [vmem:[#allocation5 + $0x284] ss:$16 sps:$4 sm:$0xff]   ;;  %v2482_v20 = vld [vmem:[#allocation5 + $0x280] ss:$16 sps:$4 sm:$0xff]  }
  0x43   :  { %1289 = vmatpush1.bf16.msra.mxu1 %v2469_v11  ;;  %v2483_v21 = vld [vmem:[#allocation5 + $0xa4] ss:$16 sps:$4 sm:$0xff]   ;;  %v2487_v23 = vld [vmem:[#allocation5 + $0xa0] ss:$16 sps:$4 sm:$0xff]   ;;  %v2552_v11 = vld [vmem:[#allocation5 + $0x8] ss:$16 sps:$4 sm:$0xff]  }
  0x44   :  { %1330 = vmatpush1.bf16.msra.mxu0 %v2470_v12  ;;  %1290 = vmatprep.subr.bf16.mxu1 %v2471_v13  ;;  %v2485_v22 = vld [vmem:[#allocation5 + $0x2a4] ss:$16 sps:$4 sm:$0xff]   ;;  %v2488_v24 = vld [vmem:[#allocation5 + $0x2a0] ss:$16 sps:$4 sm:$0xff]   ;;  %v3020_v12 = vpack.c.bf16 %v70_v7, %v70_v7  ;;  %v2636_v7 = vld [vmem:[#allocation5 + $0x1c8] ss:$16 sps:$4 sm:$0xff]  }
  0x45   :  { %1331 = vmatprep.subr.bf16.mxu0 %v2473_v14  ;;  %v2489_v25 = vld [vmem:[#allocation5 + $0xc4] ss:$16 sps:$4 sm:$0xff]   ;;  %v2493_v27 = vld [vmem:[#allocation5 + $0xc0] ss:$16 sps:$4 sm:$0xff]   ;;  %v2560_v14 = vld [vmem:[#allocation5 + $0x2c] ss:$16 sps:$4 sm:$0xff]  }
  0x46   :  { %v2491_v26 = vld [vmem:[#allocation5 + $0x2c4] ss:$16 sps:$4 sm:$0xff]   ;;  %v2494_v28 = vld [vmem:[#allocation5 + $0x2c0] ss:$16 sps:$4 sm:$0xff]  }
  0x47   :  { %1291 = vmatpush1.bf16.msra.mxu1 %v2475_v15  ;;  %v2495_v29 = vld [vmem:[#allocation5 + $0xe4] ss:$16 sps:$4 sm:$0xff]   ;;  %v2499_v31 = vld [vmem:[#allocation5 + $0xe0] ss:$16 sps:$4 sm:$0xff]  }
  0x48   :  { %1332 = vmatpush1.bf16.msra.mxu0 %v2476_v16  ;;  %1292 = vmatprep.subr.bf16.mxu1 %v2477_v17  ;;  %v2497_v30 = vld [vmem:[#allocation5 + $0x2e4] ss:$16 sps:$4 sm:$0xff]   ;;  %v2500_v32 = vld [vmem:[#allocation5 + $0x2e0] ss:$16 sps:$4 sm:$0xff]   ;;  %v2558_v16 = vld [vmem:[#allocation5 + $0x28] ss:$16 sps:$4 sm:$0xff]  }
  0x49   :  { %1333 = vmatprep.subr.bf16.mxu0 %v2479_v18  ;;  %v2501_v33 = vld [vmem:[#allocation5 + $0x104] ss:$16 sps:$4 sm:$0xff]   ;;  %v2505_v35 = vld [vmem:[#allocation5 + $0x100] ss:$16 sps:$4 sm:$0xff]   ;;  %v2566_v18 = vld [vmem:[#allocation5 + $0x4c] ss:$16 sps:$4 sm:$0xff]  }
  0x4a   :  { %v2503_v34 = vld [vmem:[#allocation5 + $0x304] ss:$16 sps:$4 sm:$0xff]   ;;  %v2506_v36 = vld [vmem:[#allocation5 + $0x300] ss:$16 sps:$4 sm:$0xff]  }
  0x4b   :  { %1293 = vmatpush1.bf16.msra.mxu1 %v2481_v19  ;;  %v2507_v37 = vld [vmem:[#allocation5 + $0x124] ss:$16 sps:$4 sm:$0xff]   ;;  %v2511_v39 = vld [vmem:[#allocation5 + $0x120] ss:$16 sps:$4 sm:$0xff]  }
  0x4c   :  { %1334 = vmatpush1.bf16.msra.mxu0 %v2482_v20  ;;  %1294 = vmatprep.subr.bf16.mxu1 %v2483_v21  ;;  %v2509_v38 = vld [vmem:[#allocation5 + $0x324] ss:$16 sps:$4 sm:$0xff]   ;;  %v2512_v40 = vld [vmem:[#allocation5 + $0x320] ss:$16 sps:$4 sm:$0xff]   ;;  %v2564_v20 = vld [vmem:[#allocation5 + $0x48] ss:$16 sps:$4 sm:$0xff]  }
  0x4d   :  { %1335 = vmatprep.subr.bf16.mxu0 %v2485_v22  ;;  %v2513_v41 = vld [vmem:[#allocation5 + $0x144] ss:$16 sps:$4 sm:$0xff]   ;;  %v2517_v43 = vld [vmem:[#allocation5 + $0x140] ss:$16 sps:$4 sm:$0xff]   ;;  %v2572_v22 = vld [vmem:[#allocation5 + $0x6c] ss:$16 sps:$4 sm:$0xff]  }
  0x4e   :  { %v2515_v42 = vld [vmem:[#allocation5 + $0x344] ss:$16 sps:$4 sm:$0xff]   ;;  %v2518_v44 = vld [vmem:[#allocation5 + $0x340] ss:$16 sps:$4 sm:$0xff]  }
  0x4f   :  { %1295 = vmatpush1.bf16.msra.mxu1 %v2487_v23  ;;  %v2519_v45 = vld [vmem:[#allocation5 + $0x164] ss:$16 sps:$4 sm:$0xff]   ;;  %v2523_v48 = vld [vmem:[#allocation5 + $0x160] ss:$16 sps:$4 sm:$0xff]  }
  0x50   :  { %1336 = vmatpush1.bf16.msra.mxu0 %v2488_v24  ;;  %1296 = vmatprep.subr.bf16.mxu1 %v2489_v25  ;;  %v2521_v46 = vld [vmem:[#allocation5 + $0x364] ss:$16 sps:$4 sm:$0xff]   ;;  %v2524_v51 = vld [vmem:[#allocation5 + $0x360] ss:$16 sps:$4 sm:$0xff]   ;;  %v2570_v24 = vld [vmem:[#allocation5 + $0x68] ss:$16 sps:$4 sm:$0xff]  }
  0x51   :  { %1337 = vmatprep.subr.bf16.mxu0 %v2491_v26  ;;  %v69_v47 = vld [vmem:[#allocation3 + $0x8] sm:$0xff]  ;;  %v71_v50 = vld [vmem:[#allocation3 + $0x18] sm:$0xff]  ;;  %v2578_v26 = vld [vmem:[#allocation5 + $0x8c] ss:$16 sps:$4 sm:$0xff]  }
  0x52   :  { %v3012_v49 = vpack.c.bf16 %v69_v47, %v69_v47  ;;  %v2525_v52 = vld [vmem:[#allocation5 + $0x184] ss:$16 sps:$4 sm:$0xff]   ;;  %v3014_v53 = vpack.c.bf16 %v71_v50, %v71_v50  ;;  %v2529_v55 = vld [vmem:[#allocation5 + $0x180] ss:$16 sps:$4 sm:$0xff]   ;;  %v2606_v50 = vld [vmem:[#allocation5 + $0x128] ss:$16 sps:$4 sm:$0xff]  }
  0x53   :  { %1297 = vmatpush1.bf16.msra.mxu1 %v2493_v27  ;;  %v2527_v54 = vld [vmem:[#allocation5 + $0x384] ss:$16 sps:$4 sm:$0xff]   ;;  %v2530_v56 = vld [vmem:[#allocation5 + $0x380] ss:$16 sps:$4 sm:$0xff]  }
  0x54   :  { %1338 = vmatpush1.bf16.msra.mxu0 %v2494_v28  ;;  %1298 = vmatprep.subr.bf16.mxu1 %v2495_v29  ;;  %v2531_v57 = vld [vmem:[#allocation5 + $0x1a4] ss:$16 sps:$4 sm:$0xff]   ;;  %v2535_v59 = vld [vmem:[#allocation5 + $0x1a0] ss:$16 sps:$4 sm:$0xff]   ;;  %v2576_v28 = vld [vmem:[#allocation5 + $0x88] ss:$16 sps:$4 sm:$0xff]  }
  0x55   :  { %1339 = vmatprep.subr.bf16.mxu0 %v2497_v30  ;;  %1316 = vmatprep.mubr.bf16.mxu1 %v3012_v49  ;;  %v2533_v58 = vld [vmem:[#allocation5 + $0x3a4] ss:$16 sps:$4 sm:$0xff]   ;;  %v2536_v60 = vld [vmem:[#allocation5 + $0x3a0] ss:$16 sps:$4 sm:$0xff]   ;;  %v2584_v30 = vld [vmem:[#allocation5 + $0xac] ss:$16 sps:$4 sm:$0xff]  }
  0x56   :  { %1357 = vmatprep.mubr.bf16.mxu0 %v3014_v53  ;;  %v2537_v61 = vld [vmem:[#allocation5 + $0x1c4] ss:$16 sps:$4 sm:$0xff]   ;;  %v2541_v63 = vld [vmem:[#allocation5 + $0x1c0] ss:$16 sps:$4 sm:$0xff]  }
  0x57   :  { %1299 = vmatpush1.bf16.msra.mxu1 %v2499_v31  ;;  %v2539_v62 = vld [vmem:[#allocation5 + $0x3c4] ss:$16 sps:$4 sm:$0xff]   ;;  %v2542_v0 = vld [vmem:[#allocation5 + $0x3c0] ss:$16 sps:$4 sm:$0xff]  }
  0x58   :  { %1340 = vmatpush1.bf16.msra.mxu0 %v2500_v32  ;;  %1300 = vmatprep.subr.bf16.mxu1 %v2501_v33  ;;  %v2543_v1 = vld [vmem:[#allocation5 + $0x1e4] ss:$16 sps:$4 sm:$0xff]   ;;  %v2547_v3 = vld [vmem:[#allocation5 + $0x1e0] ss:$16 sps:$4 sm:$0xff]   ;;  %v2582_v32 = vld [vmem:[#allocation5 + $0xa8] ss:$16 sps:$4 sm:$0xff]  }
  0x59   :  { %1341 = vmatprep.subr.bf16.mxu0 %v2503_v34  ;;  %v2545_v2 = vld [vmem:[#allocation5 + $0x3e4] ss:$16 sps:$4 sm:$0xff]   ;;  %v2548_v4 = vld [vmem:[#allocation5 + $0x3e0] ss:$16 sps:$4 sm:$0xff]   ;;  %v2590_v34 = vld [vmem:[#allocation5 + $0xcc] ss:$16 sps:$4 sm:$0xff]  }
  0x5a   :  { %v2551_v6 = vld [vmem:[#allocation5 + $0x404] ss:$16 sps:$4 sm:$0xff]   ;;  %v2549_v10 = vld [vmem:[#allocation5 + $0x400] ss:$16 sps:$4 sm:$0xff]  }
  0x5b   :  { %1301 = vmatpush1.bf16.msra.mxu1 %v2505_v35  ;;  %v2557_v13 = vld [vmem:[#allocation5 + $0x424] ss:$16 sps:$4 sm:$0xff]   ;;  %v2555_v15 = vld [vmem:[#allocation5 + $0x420] ss:$16 sps:$4 sm:$0xff]  }
  0x5c   :  { %1342 = vmatpush1.bf16.msra.mxu0 %v2506_v36  ;;  %1302 = vmatprep.subr.bf16.mxu1 %v2507_v37  ;;  %v2563_v17 = vld [vmem:[#allocation5 + $0x444] ss:$16 sps:$4 sm:$0xff]   ;;  %v2561_v19 = vld [vmem:[#allocation5 + $0x440] ss:$16 sps:$4 sm:$0xff]  }
  0x5d   :  { %1343 = vmatprep.subr.bf16.mxu0 %v2509_v38  ;;  %v2569_v21 = vld [vmem:[#allocation5 + $0x464] ss:$16 sps:$4 sm:$0xff]   ;;  %v2567_v23 = vld [vmem:[#allocation5 + $0x460] ss:$16 sps:$4 sm:$0xff]   ;;  %v2588_v38 = vld [vmem:[#allocation5 + $0xc8] ss:$16 sps:$4 sm:$0xff]  }
  0x5e   :  { %v2575_v25 = vld [vmem:[#allocation5 + $0x484] ss:$16 sps:$4 sm:$0xff]   ;;  %v2573_v27 = vld [vmem:[#allocation5 + $0x480] ss:$16 sps:$4 sm:$0xff]  }
  0x5f   :  { %1303 = vmatpush1.bf16.msra.mxu1 %v2511_v39  ;;  %v2581_v29 = vld [vmem:[#allocation5 + $0x4a4] ss:$16 sps:$4 sm:$0xff]   ;;  %v2579_v31 = vld [vmem:[#allocation5 + $0x4a0] ss:$16 sps:$4 sm:$0xff]  }
  0x60   :  { %1344 = vmatpush1.bf16.msra.mxu0 %v2512_v40  ;;  %1304 = vmatprep.subr.bf16.mxu1 %v2513_v41  ;;  %v2587_v33 = vld [vmem:[#allocation5 + $0x4c4] ss:$16 sps:$4 sm:$0xff]   ;;  %v2585_v37 = vld [vmem:[#allocation5 + $0x4c0] ss:$16 sps:$4 sm:$0xff]   ;;  %v2596_v40 = vld [vmem:[#allocation5 + $0xec] ss:$16 sps:$4 sm:$0xff]  }
  0x61   :  { %1345 = vmatprep.subr.bf16.mxu0 %v2515_v42  ;;  %v73_v35 = vld [vmem:[#allocation3 + $0x28] sm:$0xff]  ;;  %v2594_v42 = vld [vmem:[#allocation5 + $0xe8] ss:$16 sps:$4 sm:$0xff]  }
  0x62   :  { %v3025_v36 = vpack.c.bf16 %v73_v35, %v73_v35  ;;  %v2593_v39 = vld [vmem:[#allocation5 + $0x4e4] ss:$16 sps:$4 sm:$0xff]   ;;  %v2591_v41 = vld [vmem:[#allocation5 + $0x4e0] ss:$16 sps:$4 sm:$0xff]  }
  0x63   :  { %1305 = vmatpush1.bf16.msra.mxu1 %v2517_v43  ;;  %v2599_v43 = vld [vmem:[#allocation5 + $0x504] ss:$16 sps:$4 sm:$0xff]  }
  0x64   :  { %1346 = vmatpush1.bf16.msra.mxu0 %v2518_v44  ;;  %1306 = vmatprep.subr.bf16.mxu1 %v2519_v45  ;;  %v2602_v44 = vld [vmem:[#allocation5 + $0x10c] ss:$16 sps:$4 sm:$0xff]   ;;  %v2597_v45 = vld [vmem:[#allocation5 + $0x500] ss:$16 sps:$4 sm:$0xff]   ;;  %v2605_v47 = vld [vmem:[#allocation5 + $0x524] ss:$16 sps:$4 sm:$0xff]  }
  0x65   :  { %1347 = vmatprep.subr.bf16.mxu0 %v2521_v46  ;;  %v2600_v46 = vld [vmem:[#allocation5 + $0x108] ss:$16 sps:$4 sm:$0xff]   ;;  %v2749_v35 = vld [vmem:[#allocation7 + $0x4] ss:$8 sps:$4 sm:$0xff]  }
  0x67   :  { %1307 = vmatpush1.bf16.msra.mxu1 %v2523_v48  ;;  %v2608_v48 = vld [vmem:[#allocation5 + $0x12c] ss:$16 sps:$4 sm:$0xff]  }
  0x68   :  { %1348 = vmatpush1.bf16.msra.mxu0 %v2524_v51  ;;  %1308 = vmatprep.subr.bf16.mxu1 %v2525_v52  ;;  %v2611_v51 = vld [vmem:[#allocation5 + $0x544] ss:$16 sps:$4 sm:$0xff]   ;;  %v2614_v52 = vld [vmem:[#allocation5 + $0x14c] ss:$16 sps:$4 sm:$0xff]  }
  0x69   :  { %1349 = vmatprep.subr.bf16.mxu0 %v2527_v54  ;;  %v2609_v54 = vld [vmem:[#allocation5 + $0x540] ss:$16 sps:$4 sm:$0xff]  }
  0x6b   :  { %1309 = vmatpush1.bf16.msra.mxu1 %v2529_v55  ;;  %v2612_v55 = vld [vmem:[#allocation5 + $0x148] ss:$16 sps:$4 sm:$0xff]  }
  0x6c   :  { %1350 = vmatpush1.bf16.msra.mxu0 %v2530_v56  ;;  %1310 = vmatprep.subr.bf16.mxu1 %v2531_v57  ;;  %v2617_v56 = vld [vmem:[#allocation5 + $0x564] ss:$16 sps:$4 sm:$0xff]   ;;  %v2620_v57 = vld [vmem:[#allocation5 + $0x16c] ss:$16 sps:$4 sm:$0xff]  }
  0x6d   :  { %1351 = vmatprep.subr.bf16.mxu0 %v2533_v58  ;;  %v2615_v58 = vld [vmem:[#allocation5 + $0x560] ss:$16 sps:$4 sm:$0xff]  }
  0x6f   :  { %1311 = vmatpush1.bf16.msra.mxu1 %v2535_v59  ;;  %v2618_v59 = vld [vmem:[#allocation5 + $0x168] ss:$16 sps:$4 sm:$0xff]  }
  0x70   :  { %1352 = vmatpush1.bf16.msra.mxu0 %v2536_v60  ;;  %1312 = vmatprep.subr.bf16.mxu1 %v2537_v61  ;;  %v2623_v60 = vld [vmem:[#allocation5 + $0x584] ss:$16 sps:$4 sm:$0xff]   ;;  %v2626_v61 = vld [vmem:[#allocation5 + $0x18c] ss:$16 sps:$4 sm:$0xff]  }
  0x71   :  { %1353 = vmatprep.subr.bf16.mxu0 %v2539_v62  ;;  %v2621_v62 = vld [vmem:[#allocation5 + $0x580] ss:$16 sps:$4 sm:$0xff]  }
  0x73   :  { %1313 = vmatpush1.bf16.msra.mxu1 %v2541_v63  ;;  %v2624_v63 = vld [vmem:[#allocation5 + $0x188] ss:$16 sps:$4 sm:$0xff]  }
  0x74   :  { %1354 = vmatpush1.bf16.msra.mxu0 %v2542_v0  ;;  %1314 = vmatprep.subr.bf16.mxu1 %v2543_v1  ;;  %v2629_v0 = vld [vmem:[#allocation5 + $0x5a4] ss:$16 sps:$4 sm:$0xff]   ;;  %v2632_v1 = vld [vmem:[#allocation5 + $0x1ac] ss:$16 sps:$4 sm:$0xff]  }
  0x75   :  { %1355 = vmatprep.subr.bf16.mxu0 %v2545_v2  ;;  %v2627_v2 = vld [vmem:[#allocation5 + $0x5a0] ss:$16 sps:$4 sm:$0xff]  }
  0x77   :  { %1315 = vmatpush1.bf16.msra.mxu1 %v2547_v3  ;;  %v2630_v3 = vld [vmem:[#allocation5 + $0x1a8] ss:$16 sps:$4 sm:$0xff]  }
  0x78   :  { %1356 = vmatpush1.bf16.msra.mxu0 %v2548_v4  ;;  %1448 = vmatprep.subr.bf16.mxu1 %v2554_v8  ;;  %v2635_v4 = vld [vmem:[#allocation5 + $0x5c4] ss:$16 sps:$4 sm:$0xff]  }
  0x79   :  { %1366 = vmatprep.subr.bf16.mxu0 %v2551_v6  ;;  %v2633_v6 = vld [vmem:[#allocation5 + $0x5c0] ss:$16 sps:$4 sm:$0xff]   ;;  %v2641_v8 = vld [vmem:[#allocation5 + $0x5e4] ss:$16 sps:$4 sm:$0xff]  }
  0x7a   :  { %1317 = vmatmul.mubr.bf16.vlgmr.msra.gmra.mrb[0].mxu1 %v3018_v9 }
  0x7b   :  { %1358 = vmatmul.mubr.bf16.vlgmr.msra.gmra.mrb[0].mxu0 %v3020_v12  ;;  %1449 = vmatpush1.bf16.msra.mxu1 %v2552_v11  ;;  %v2639_v11 = vld [vmem:[#allocation5 + $0x5e0] ss:$16 sps:$4 sm:$0xff]  }
  0x7c   :  { %1367 = vmatpush1.bf16.msra.mxu0 %v2549_v10  ;;  %1450 = vmatprep.subr.bf16.mxu1 %v2560_v14  ;;  %v2644_v10 = vld [vmem:[#allocation5 + $0x1ec] ss:$16 sps:$4 sm:$0xff]  }
  0x7d   :  { %1368 = vmatprep.subr.bf16.mxu0 %v2557_v13  ;;  %1480 = vmatprep.mubr.bf16.mxu1 %v3012_v49  ;;  %v2603_v49 = vld [vmem:[#allocation5 + $0x520] ss:$16 sps:$4 sm:$0xff]   ;;  %v2642_v13 = vld [vmem:[#allocation5 + $0x1e8] ss:$16 sps:$4 sm:$0xff]  }
  0x7e   :  { %1398 = vmatprep.mubr.bf16.mxu0 %v3025_v36  ;;  %v72_v14 = vld [vmem:[#allocation3 + $0x20] sm:$0xff] }
  0x7f   :  { %1451 = vmatpush1.bf16.msra.mxu1 %v2558_v16  ;;  %v2653_v16 = vld [vmem:[#allocation5 + $0x604] ss:$16 sps:$4 sm:$0xff]  }
  0x80   :  { %1369 = vmatpush1.bf16.msra.mxu0 %v2555_v15  ;;  %1452 = vmatprep.subr.bf16.mxu1 %v2566_v18  ;;  %v2647_v15 = vld [vmem:[#allocation5 + $0x20c] ss:$16 sps:$4 sm:$0xff]   ;;  %v2645_v18 = vld [vmem:[#allocation5 + $0x208] ss:$16 sps:$4 sm:$0xff]  }
  0x81   :  { %1370 = vmatprep.subr.bf16.mxu0 %v2563_v17  ;;  %v3028_v17 = vpack.c.bf16 %v72_v14, %v72_v14  ;;  %v2701_v14 = vld [vmem:[#allocation5 + $0x42c] ss:$16 sps:$4 sm:$0xff]  }
  0x83   :  { %1453 = vmatpush1.bf16.msra.mxu1 %v2564_v20  ;;  %v2650_v20 = vld [vmem:[#allocation5 + $0x22c] ss:$16 sps:$4 sm:$0xff]  }
  0x84   :  { %1371 = vmatpush1.bf16.msra.mxu0 %v2561_v19  ;;  %1454 = vmatprep.subr.bf16.mxu1 %v2572_v22  ;;  %v2651_v19 = vld [vmem:[#allocation5 + $0x600] ss:$16 sps:$4 sm:$0xff]   ;;  %v2656_v22 = vld [vmem:[#allocation5 + $0x24c] ss:$16 sps:$4 sm:$0xff]  }
  0x85   :  { %1372 = vmatprep.subr.bf16.mxu0 %v2569_v21  ;;  %v2648_v21 = vld [vmem:[#allocation5 + $0x228] ss:$16 sps:$4 sm:$0xff]  }
  0x87   :  { %1455 = vmatpush1.bf16.msra.mxu1 %v2570_v24  ;;  %v2654_v24 = vld [vmem:[#allocation5 + $0x248] ss:$16 sps:$4 sm:$0xff]  }
  0x88   :  { %1373 = vmatpush1.bf16.msra.mxu0 %v2567_v23  ;;  %1456 = vmatprep.subr.bf16.mxu1 %v2578_v26  ;;  %v2932_v23 = vmov 0   ;;  %v2659_v26 = vld [vmem:[#allocation5 + $0x26c] ss:$16 sps:$4 sm:$0xff]  }
  0x89   :  { %1374 = vmatprep.subr.bf16.mxu0 %v2575_v25  ;;  %v74_v25 = vld [vmem:[#allocation3 + $0x30] sm:$0xff] }
  0x8b   :  { %1457 = vmatpush1.bf16.msra.mxu1 %v2576_v28  ;;  %v3034_v28 = vpack.c.bf16 %v74_v25, %v74_v25  ;;  %v2783_v25 = vld [vmem:[#allocation7 + $0xc0] ss:$8 sps:$4 sm:$0xff]  }
  0x8c   :  { %1375 = vmatpush1.bf16.msra.mxu0 %v2573_v27  ;;  %1458 = vmatprep.subr.bf16.mxu1 %v2584_v30  ;;  %v2657_v27 = vld [vmem:[#allocation5 + $0x268] ss:$16 sps:$4 sm:$0xff]   ;;  %v2665_v30 = vld [vmem:[#allocation5 + $0x2ac] ss:$16 sps:$4 sm:$0xff]  }
  0x8d   :  { %1376 = vmatprep.subr.bf16.mxu0 %v2581_v29  ;;  %v2662_v29 = vld [vmem:[#allocation5 + $0x28c] ss:$16 sps:$4 sm:$0xff]  }
  0x8f   :  { %1459 = vmatpush1.bf16.msra.mxu1 %v2582_v32  ;;  %v2668_v32 = vld [vmem:[#allocation5 + $0x2cc] ss:$16 sps:$4 sm:$0xff]  }
  0x90   :  { %1377 = vmatpush1.bf16.msra.mxu0 %v2579_v31  ;;  %1460 = vmatprep.subr.bf16.mxu1 %v2590_v34  ;;  %v2663_v31 = vld [vmem:[#allocation5 + $0x2a8] ss:$16 sps:$4 sm:$0xff]  }
  0x91   :  { %1378 = vmatprep.subr.bf16.mxu0 %v2587_v33  ;;  %v2671_v33 = vld [vmem:[#allocation5 + $0x2ec] ss:$16 sps:$4 sm:$0xff]   ;;  %v2747_v34 = vld [vmem:[#allocation7] ss:$8 sps:$4 sm:$0xff]  }
  0x93   :  { %1461 = vmatpush1.bf16.msra.mxu1 %v2588_v38  ;;  %v2669_v38 = vld [vmem:[#allocation5 + $0x2e8] ss:$16 sps:$4 sm:$0xff]  }
  0x94   :  { %1379 = vmatpush1.bf16.msra.mxu0 %v2585_v37  ;;  %1462 = vmatprep.subr.bf16.mxu1 %v2596_v40  ;;  %v2752_v37 = vld [vmem:[#allocation7 + $0x14] ss:$8 sps:$4 sm:$0xff]  }
  0x95   :  { %1380 = vmatprep.subr.bf16.mxu0 %v2593_v39  ;;  %v2750_v39 = vld [vmem:[#allocation7 + $0x10] ss:$8 sps:$4 sm:$0xff]   ;;  %v2674_v40 = vld [vmem:[#allocation5 + $0x30c] ss:$16 sps:$4 sm:$0xff]  }
  0x97   :  { %1463 = vmatpush1.bf16.msra.mxu1 %v2594_v42  ;;  %v2672_v42 = vld [vmem:[#allocation5 + $0x308] ss:$16 sps:$4 sm:$0xff]  }
  0x98   :  { %1381 = vmatpush1.bf16.msra.mxu0 %v2591_v41  ;;  %1464 = vmatprep.subr.bf16.mxu1 %v2602_v44  ;;  %v2755_v41 = vld [vmem:[#allocation7 + $0x24] ss:$8 sps:$4 sm:$0xff]  }
  0x99   :  { %1382 = vmatprep.subr.bf16.mxu0 %v2599_v43  ;;  %v2753_v43 = vld [vmem:[#allocation7 + $0x20] ss:$8 sps:$4 sm:$0xff]   ;;  %v2677_v44 = vld [vmem:[#allocation5 + $0x32c] ss:$16 sps:$4 sm:$0xff]  }
  0x9b   :  { %1465 = vmatpush1.bf16.msra.mxu1 %v2600_v46  ;;  %v2675_v46 = vld [vmem:[#allocation5 + $0x328] ss:$16 sps:$4 sm:$0xff]  }
  0x9c   :  { %1383 = vmatpush1.bf16.msra.mxu0 %v2597_v45  ;;  %1466 = vmatprep.subr.bf16.mxu1 %v2608_v48  ;;  %v2758_v45 = vld [vmem:[#allocation7 + $0x34] ss:$8 sps:$4 sm:$0xff]  }
  0x9d   :  { %1384 = vmatprep.subr.bf16.mxu0 %v2605_v47  ;;  %v2756_v47 = vld [vmem:[#allocation7 + $0x30] ss:$8 sps:$4 sm:$0xff]   ;;  %v2680_v48 = vld [vmem:[#allocation5 + $0x34c] ss:$16 sps:$4 sm:$0xff]  }
  0x9f   :  { %1467 = vmatpush1.bf16.msra.mxu1 %v2606_v50  ;;  %v2678_v50 = vld [vmem:[#allocation5 + $0x348] ss:$16 sps:$4 sm:$0xff]  }
  0xa0   :  { %1385 = vmatpush1.bf16.msra.mxu0 %v2603_v49  ;;  %1468 = vmatprep.subr.bf16.mxu1 %v2614_v52  ;;  %v2761_v49 = vld [vmem:[#allocation7 + $0x44] ss:$8 sps:$4 sm:$0xff]  }
  0xa1   :  { %1386 = vmatprep.subr.bf16.mxu0 %v2611_v51  ;;  %v2759_v51 = vld [vmem:[#allocation7 + $0x40] ss:$8 sps:$4 sm:$0xff]   ;;  %v2683_v52 = vld [vmem:[#allocation5 + $0x36c] ss:$16 sps:$4 sm:$0xff]  }
  0xa3   :  { %1469 = vmatpush1.bf16.msra.mxu1 %v2612_v55  ;;  %v2681_v55 = vld [vmem:[#allocation5 + $0x368] ss:$16 sps:$4 sm:$0xff]  }
  0xa4   :  { %1387 = vmatpush1.bf16.msra.mxu0 %v2609_v54  ;;  %1470 = vmatprep.subr.bf16.mxu1 %v2620_v57  ;;  %v2764_v54 = vld [vmem:[#allocation7 + $0x54] ss:$8 sps:$4 sm:$0xff]  }
  0xa5   :  { %1388 = vmatprep.subr.bf16.mxu0 %v2617_v56  ;;  %v2762_v56 = vld [vmem:[#allocation7 + $0x50] ss:$8 sps:$4 sm:$0xff]   ;;  %v2686_v57 = vld [vmem:[#allocation5 + $0x38c] ss:$16 sps:$4 sm:$0xff]  }
  0xa7   :  { %1471 = vmatpush1.bf16.msra.mxu1 %v2618_v59  ;;  %v2684_v59 = vld [vmem:[#allocation5 + $0x388] ss:$16 sps:$4 sm:$0xff]  }
  0xa8   :  { %1389 = vmatpush1.bf16.msra.mxu0 %v2615_v58  ;;  %1472 = vmatprep.subr.bf16.mxu1 %v2626_v61  ;;  %v2767_v58 = vld [vmem:[#allocation7 + $0x64] ss:$8 sps:$4 sm:$0xff]  }
  0xa9   :  { %1390 = vmatprep.subr.bf16.mxu0 %v2623_v60  ;;  %v2765_v60 = vld [vmem:[#allocation7 + $0x60] ss:$8 sps:$4 sm:$0xff]   ;;  %v2689_v61 = vld [vmem:[#allocation5 + $0x3ac] ss:$16 sps:$4 sm:$0xff]  }
  0xab   :  { %1473 = vmatpush1.bf16.msra.mxu1 %v2624_v63  ;;  %v2687_v63 = vld [vmem:[#allocation5 + $0x3a8] ss:$16 sps:$4 sm:$0xff]  }
  0xac   :  { %1391 = vmatpush1.bf16.msra.mxu0 %v2621_v62  ;;  %1474 = vmatprep.subr.bf16.mxu1 %v2632_v1  ;;  %v2770_v62 = vld [vmem:[#allocation7 + $0x74] ss:$8 sps:$4 sm:$0xff]  }
  0xad   :  { %1392 = vmatprep.subr.bf16.mxu0 %v2629_v0  ;;  %v2768_v0 = vld [vmem:[#allocation7 + $0x70] ss:$8 sps:$4 sm:$0xff]   ;;  %v2692_v1 = vld [vmem:[#allocation5 + $0x3cc] ss:$16 sps:$4 sm:$0xff]  }
  0xaf   :  { %1475 = vmatpush1.bf16.msra.mxu1 %v2630_v3  ;;  %v2690_v3 = vld [vmem:[#allocation5 + $0x3c8] ss:$16 sps:$4 sm:$0xff]  }
  0xb0   :  { %1393 = vmatpush1.bf16.msra.mxu0 %v2627_v2  ;;  %1476 = vmatprep.subr.bf16.mxu1 %v2638_v5  ;;  %v2773_v2 = vld [vmem:[#allocation7 + $0x84] ss:$8 sps:$4 sm:$0xff]  }
  0xb1   :  { %1394 = vmatprep.subr.bf16.mxu0 %v2635_v4  ;;  %v2771_v4 = vld [vmem:[#allocation7 + $0x80] ss:$8 sps:$4 sm:$0xff]   ;;  %v2695_v5 = vld [vmem:[#allocation5 + $0x3ec] ss:$16 sps:$4 sm:$0xff]  }
  0xb3   :  { %1477 = vmatpush1.bf16.msra.mxu1 %v2636_v7  ;;  %v2693_v7 = vld [vmem:[#allocation5 + $0x3e8] ss:$16 sps:$4 sm:$0xff]  }
  0xb4   :  { %1395 = vmatpush1.bf16.msra.mxu0 %v2633_v6  ;;  %1478 = vmatprep.subr.bf16.mxu1 %v2644_v10  ;;  %v2776_v6 = vld [vmem:[#allocation7 + $0x94] ss:$8 sps:$4 sm:$0xff]  }
  0xb5   :  { %1396 = vmatprep.subr.bf16.mxu0 %v2641_v8  ;;  %v2774_v8 = vld [vmem:[#allocation7 + $0x90] ss:$8 sps:$4 sm:$0xff]   ;;  %v2698_v10 = vld [vmem:[#allocation5 + $0x40c] ss:$16 sps:$4 sm:$0xff]  }
  0xb7   :  { %1479 = vmatpush1.bf16.msra.mxu1 %v2642_v13  ;;  %v2696_v13 = vld [vmem:[#allocation5 + $0x408] ss:$16 sps:$4 sm:$0xff]  }
  0xb8   :  { %1397 = vmatpush1.bf16.msra.mxu0 %v2639_v11  ;;  %1489 = vmatprep.subr.bf16.mxu1 %v2647_v15  ;;  %v2779_v11 = vld [vmem:[#allocation7 + $0xa4] ss:$8 sps:$4 sm:$0xff]   ;;  %v2777_v15 = vld [vmem:[#allocation7 + $0xa0] ss:$8 sps:$4 sm:$0xff]  }
  0xb9   :  { %1407 = vmatprep.subr.bf16.mxu0 %v2653_v16  ;;  %v2782_v16 = vld [vmem:[#allocation7 + $0xb4] ss:$8 sps:$4 sm:$0xff]  }
  0xba   :  { %1481 = vmatmul.mubr.bf16.vlgmr.msra.gmra.mrb[4].mxu1 %v3018_v9  ;;  %v2660_v9 = vld [vmem:[#allocation5 + $0x288] ss:$16 sps:$4 sm:$0xff]  }
  0xbb   :  { %1399 = vmatmul.mubr.bf16.vlgmr.msra.gmra.mrb[0].mxu0 %v3028_v17  ;;  %1490 = vmatpush1.bf16.msra.mxu1 %v2645_v18  ;;  %v2699_v18 = vld [vmem:[#allocation5 + $0x428] ss:$16 sps:$4 sm:$0xff]  }
  0xbc   :  { %1408 = vmatpush1.bf16.msra.mxu0 %v2651_v19  ;;  %1491 = vmatprep.subr.bf16.mxu1 %v2650_v20  ;;  %v2704_v19 = vld [vmem:[#allocation5 + $0x44c] ss:$16 sps:$4 sm:$0xff]   ;;  %v2780_v20 = vld [vmem:[#allocation7 + $0xb0] ss:$8 sps:$4 sm:$0xff]  }
  0xbd   :  { %1439 = vmatprep.mubr.bf16.mxu0 %v2932_v23  ;;  %1521 = vmatprep.mubr.bf16.mxu1 %v3014_v53  ;;  %v2666_v53 = vld [vmem:[#allocation5 + $0x2c8] ss:$16 sps:$4 sm:$0xff]  }
  0xbe   :  { %2020 = vmatprep.subr.bf16.mxu0 %v2749_v35  ;;  %v2720_v35 = vld [vmem:[#allocation5 + $0x508] ss:$16 sps:$4 sm:$0xff]  }
  0xbf   :  { %1492 = vmatpush1.bf16.msra.mxu1 %v2648_v21  ;;  %v2785_v21 = vld [vmem:[#allocation7 + $0xc4] ss:$8 sps:$4 sm:$0xff]  }
  0xc0   :  { %1493 = vmatprep.subr.bf16.mxu1 %v2656_v22  ;;  %v2702_v22 = vld [vmem:[#allocation5 + $0x448] ss:$16 sps:$4 sm:$0xff]  }
  0xc3   :  { %1494 = vmatpush1.bf16.msra.mxu1 %v2654_v24  ;;  %v2707_v24 = vld [vmem:[#allocation5 + $0x46c] ss:$16 sps:$4 sm:$0xff]  }
  0xc4   :  { %1495 = vmatprep.subr.bf16.mxu1 %v2659_v26  ;;  %v2788_v26 = vld [vmem:[#allocation7 + $0xd4] ss:$8 sps:$4 sm:$0xff]  }
  0xc7   :  { %2346 = vmatmul.mubr.msk.bf16.vlgmr.msra.gmra.mrb[0].mxu0 %vm1280_vm0, %v3034_v28  ;;  %1496 = vmatpush1.bf16.msra.mxu1 %v2657_v27  ;;  %v2710_v27 = vld [vmem:[#allocation5 + $0x48c] ss:$16 sps:$4 sm:$0xff]  }
  0xc8   :  { %1497 = vmatprep.subr.bf16.mxu1 %v2662_v29  ;;  %2021 = vmatpush1.bf16.msra.mxu0 %v2747_v34  ;;  %v2708_v29 = vld [vmem:[#allocation5 + $0x488] ss:$16 sps:$4 sm:$0xff]   ;;  %v2722_v34 = vld [vmem:[#allocation5 + $0x50c] ss:$16 sps:$4 sm:$0xff]  }
  0xc9   :  { %2022 = vmatprep.subr.bf16.mxu0 %v2752_v37  ;;  %v2725_v37 = vld [vmem:[#allocation5 + $0x52c] ss:$16 sps:$4 sm:$0xff]  }
  0xcb   :  { %1498 = vmatpush1.bf16.msra.mxu1 %v2660_v9  ;;  %v2713_v9 = vld [vmem:[#allocation5 + $0x4ac] ss:$16 sps:$4 sm:$0xff]  }
  0xcc   :  { %1499 = vmatprep.subr.bf16.mxu1 %v2665_v30  ;;  %2023 = vmatpush1.bf16.msra.mxu0 %v2750_v39  ;;  %v2711_v30 = vld [vmem:[#allocation5 + $0x4a8] ss:$16 sps:$4 sm:$0xff]  }
  0xcd   :  { %2024 = vmatprep.subr.bf16.mxu0 %v2755_v41  ;;  %v2723_v39 = vld [vmem:[#allocation5 + $0x528] ss:$16 sps:$4 sm:$0xff]   ;;  %v2728_v41 = vld [vmem:[#allocation5 + $0x54c] ss:$16 sps:$4 sm:$0xff]  }
  0xcf   :  { %1500 = vmatpush1.bf16.msra.mxu1 %v2663_v31  ;;  %v2716_v31 = vld [vmem:[#allocation5 + $0x4cc] ss:$16 sps:$4 sm:$0xff]  }
  0xd0   :  { %1501 = vmatprep.subr.bf16.mxu1 %v2668_v32  ;;  %2025 = vmatpush1.bf16.msra.mxu0 %v2753_v43  ;;  %v2714_v32 = vld [vmem:[#allocation5 + $0x4c8] ss:$16 sps:$4 sm:$0xff]  }
  0xd1   :  { %2026 = vmatprep.subr.bf16.mxu0 %v2758_v45  ;;  %v2726_v43 = vld [vmem:[#allocation5 + $0x548] ss:$16 sps:$4 sm:$0xff]   ;;  %v2731_v45 = vld [vmem:[#allocation5 + $0x56c] ss:$16 sps:$4 sm:$0xff]  }
  0xd3   :  { %1502 = vmatpush1.bf16.msra.mxu1 %v2666_v53  ;;  %v2719_v53 = vld [vmem:[#allocation5 + $0x4ec] ss:$16 sps:$4 sm:$0xff]  }
  0xd4   :  { %1503 = vmatprep.subr.bf16.mxu1 %v2671_v33  ;;  %2027 = vmatpush1.bf16.msra.mxu0 %v2756_v47  ;;  %v2717_v33 = vld [vmem:[#allocation5 + $0x4e8] ss:$16 sps:$4 sm:$0xff]   ;;  %v2734_v47 = vld [vmem:[#allocation5 + $0x58c] ss:$16 sps:$4 sm:$0xff]  }
  0xd5   :  { %2028 = vmatprep.subr.bf16.mxu0 %v2761_v49  ;;  %v2732_v49 = vld [vmem:[#allocation5 + $0x588] ss:$16 sps:$4 sm:$0xff]  }
  0xd7   :  { %1504 = vmatpush1.bf16.msra.mxu1 %v2669_v38  ;;  %v2791_v38 = vld [vmem:[#allocation7 + $0xe4] ss:$8 sps:$4 sm:$0xff]  }
  0xd8   :  { %1505 = vmatprep.subr.bf16.mxu1 %v2674_v40  ;;  %2029 = vmatpush1.bf16.msra.mxu0 %v2759_v51  ;;  %v2789_v40 = vld [vmem:[#allocation7 + $0xe0] ss:$8 sps:$4 sm:$0xff]  }
  0xd9   :  { %2030 = vmatprep.subr.bf16.mxu0 %v2764_v54  ;;  %v2735_v51 = vld [vmem:[#allocation5 + $0x5a8] ss:$16 sps:$4 sm:$0xff]  }
  0xda   :  { %v2738_v54 = vld [vmem:[#allocation5 + $0x5c8] ss:$16 sps:$4 sm:$0xff]  }
  0xdb   :  { %1506 = vmatpush1.bf16.msra.mxu1 %v2672_v42  ;;  %v2794_v42 = vld [vmem:[#allocation7 + $0xf4] ss:$8 sps:$4 sm:$0xff]  }
  0xdc   :  { %1507 = vmatprep.subr.bf16.mxu1 %v2677_v44  ;;  %2031 = vmatpush1.bf16.msra.mxu0 %v2762_v56  ;;  %v2792_v44 = vld [vmem:[#allocation7 + $0xf0] ss:$8 sps:$4 sm:$0xff]  }
  0xdd   :  { %2032 = vmatprep.subr.bf16.mxu0 %v2767_v58  ;;  %v2741_v56 = vld [vmem:[#allocation5 + $0x5e8] ss:$16 sps:$4 sm:$0xff]  }
  0xde   :  { %v2744_v58 = vld [vmem:[#allocation5 + $0x608] ss:$16 sps:$4 sm:$0xff]  }
  0xdf   :  { %1508 = vmatpush1.bf16.msra.mxu1 %v2675_v46  ;;  %v2729_v46 = vld [vmem:[#allocation5 + $0x568] ss:$16 sps:$4 sm:$0xff]  }
  0xe0   :  { %1509 = vmatprep.subr.bf16.mxu1 %v2680_v48  ;;  %2033 = vmatpush1.bf16.msra.mxu0 %v2765_v60  ;;  %v2797_v48 = vld [vmem:[#allocation7 + $0x104] ss:$8 sps:$4 sm:$0xff]  }
  0xe1   :  { %2034 = vmatprep.subr.bf16.mxu0 %v2770_v62 }
  0xe3   :  { %1510 = vmatpush1.bf16.msra.mxu1 %v2678_v50  ;;  %v2737_v50 = vld [vmem:[#allocation5 + $0x5ac] ss:$16 sps:$4 sm:$0xff]  }
  0xe4   :  { %1511 = vmatprep.subr.bf16.mxu1 %v2683_v52  ;;  %2035 = vmatpush1.bf16.msra.mxu0 %v2768_v0  ;;  %v2740_v52 = vld [vmem:[#allocation5 + $0x5cc] ss:$16 sps:$4 sm:$0xff]  }
  0xe5   :  { %2036 = vmatprep.subr.bf16.mxu0 %v2773_v2 }
  0xe7   :  { %1512 = vmatpush1.bf16.msra.mxu1 %v2681_v55  ;;  %v2743_v55 = vld [vmem:[#allocation5 + $0x5ec] ss:$16 sps:$4 sm:$0xff]  }
  0xe8   :  { %1513 = vmatprep.subr.bf16.mxu1 %v2686_v57  ;;  %2037 = vmatpush1.bf16.msra.mxu0 %v2771_v4  ;;  %v2746_v57 = vld [vmem:[#allocation5 + $0x60c] ss:$16 sps:$4 sm:$0xff]  }
  0xe9   :  { %2038 = vmatprep.subr.bf16.mxu0 %v2776_v6 }
  0xeb   :  { %1514 = vmatpush1.bf16.msra.mxu1 %v2684_v59 }
  0xec   :  { %1515 = vmatprep.subr.bf16.mxu1 %v2689_v61  ;;  %2039 = vmatpush1.bf16.msra.mxu0 %v2774_v8 }
  0xed   :  { %2040 = vmatprep.subr.bf16.mxu0 %v2779_v11 }
  0xef   :  { %1516 = vmatpush1.bf16.msra.mxu1 %v2687_v63  ;;  %v280_v63 = vlaneseq }
  0xf0   :  { %1517 = vmatprep.subr.bf16.mxu1 %v2692_v1  ;;  %2041 = vmatpush1.bf16.msra.mxu0 %v2777_v15 }
  0xf1   :  { %2042 = vmatprep.subr.bf16.mxu0 %v2782_v16  ;;  %v3044_v0 = vshrl.u32 %v280_v63, 7 }
  0xf3   :  { %1518 = vmatpush1.bf16.msra.mxu1 %v2690_v3  ;;  %v3047_v1 = vsub.s32 0, %v3044_v0 }
  0xf4   :  { %1519 = vmatprep.subr.bf16.mxu1 %v2695_v5  ;;  %2043 = vmatpush1.bf16.msra.mxu0 %v2780_v20 }
  0xf5   :  { %2044 = vmatprep.subr.bf16.mxu0 %v2785_v21  ;;  %v2800_v21 = vld [vmem:[#allocation7 + $0x114] ss:$8 sps:$4 sm:$0xff]  }
  0xf7   :  { %1520 = vmatpush1.bf16.msra.mxu1 %v2693_v7 }
  0xf8   :  { %1530 = vmatprep.subr.bf16.mxu1 %v2698_v10  ;;  %2045 = vmatpush1.bf16.msra.mxu0 %v2783_v25  ;;  %v2801_v25 = vld [vmem:[#allocation7 + $0x120] ss:$8 sps:$4 sm:$0xff]  }
  0xf9   :  { %2046 = vmatprep.subr.bf16.mxu0 %v2788_v26  ;;  %v2806_v26 = vld [vmem:[#allocation7 + $0x134] ss:$8 sps:$4 sm:$0xff]  }
  0xfa   :  { %1522 = vmatmul.mubr.bf16.vlgmr.msra.gmra.mrb[4].mxu1 %v3020_v12  ;;  %v2705_v12 = vld [vmem:[#allocation5 + $0x468] ss:$16 sps:$4 sm:$0xff]  }
  0xfb   :  { %1531 = vmatpush1.bf16.msra.mxu1 %v2696_v13  ;;  %1562 = vmatprep.mubr.bf16.mxu1 %v3025_v36  ;;  %v2786_v36 = vld [vmem:[#allocation7 + $0xd0] ss:$8 sps:$4 sm:$0xff]  }
  0xfc   :  { %1532 = vmatprep.subr.bf16.mxu1 %v2701_v14  ;;  %2047 = vmatpush1.bf16.msra.mxu0 %v2786_v36  ;;  %v2807_v36 = vld [vmem:[#allocation7 + $0x140] ss:$8 sps:$4 sm:$0xff]  }
  0xfd   :  { %2048 = vmatprep.subr.bf16.mxu0 %v2791_v38  ;;  %v2827_v38 = vld [vmem:[#allocation7 + $0x1a4] ss:$8 sps:$4 sm:$0xff]  }
  0xff   :  { %1533 = vmatpush1.bf16.msra.mxu1 %v2699_v18 }
 0x100   :  { %1534 = vmatprep.subr.bf16.mxu1 %v2704_v19  ;;  %2049 = vmatpush1.bf16.msra.mxu0 %v2789_v40  ;;  %v2795_v19 = vld [vmem:[#allocation7 + $0x100] ss:$8 sps:$4 sm:$0xff]   ;;  %v2830_v40 = vld [vmem:[#allocation7 + $0x1b4] ss:$8 sps:$4 sm:$0xff]  }
 0x101   :  { %2050 = vmatprep.subr.bf16.mxu0 %v2794_v42  ;;  %v2833_v42 = vld [vmem:[#allocation7 + $0x1c4] ss:$8 sps:$4 sm:$0xff]  }
 0x103   :  { %1535 = vmatpush1.bf16.msra.mxu1 %v2702_v22  ;;  %v2798_v22 = vld [vmem:[#allocation7 + $0x110] ss:$8 sps:$4 sm:$0xff]  }
 0x104   :  { %1536 = vmatprep.subr.bf16.mxu1 %v2707_v24  ;;  %2051 = vmatpush1.bf16.msra.mxu0 %v2792_v44  ;;  %v2803_v24 = vld [vmem:[#allocation7 + $0x124] ss:$8 sps:$4 sm:$0xff]   ;;  %v2836_v44 = vld [vmem:[#allocation7 + $0x1d4] ss:$8 sps:$4 sm:$0xff]  }
 0x105   :  { %2061 = vmatprep.subr.bf16.mxu0 %v2797_v48  ;;  %v2842_v48 = vld [vmem:[#allocation7 + $0x1f4] ss:$8 sps:$4 sm:$0xff]  }
 0x107   :  { %1537 = vmatpush1.bf16.msra.mxu1 %v2705_v12  ;;  %v2804_v12 = vld [vmem:[#allocation7 + $0x130] ss:$8 sps:$4 sm:$0xff]  }
 0x108   :  { %1538 = vmatprep.subr.bf16.mxu1 %v2710_v27  ;;  %v2809_v27 = vld [vmem:[#allocation7 + $0x144] ss:$8 sps:$4 sm:$0xff]  }
 0x10b   :  { %1539 = vmatpush1.bf16.msra.mxu1 %v2708_v29  ;;  %v2812_v29 = vld [vmem:[#allocation7 + $0x154] ss:$8 sps:$4 sm:$0xff]  }
 0x10c   :  { %1540 = vmatprep.subr.bf16.mxu1 %v2713_v9  ;;  %v2810_v9 = vld [vmem:[#allocation7 + $0x150] ss:$8 sps:$4 sm:$0xff]  }
 0x10f   :  { %1541 = vmatpush1.bf16.msra.mxu1 %v2711_v30  ;;  %v2815_v30 = vld [vmem:[#allocation7 + $0x164] ss:$8 sps:$4 sm:$0xff]  }
 0x110   :  { %1542 = vmatprep.subr.bf16.mxu1 %v2716_v31  ;;  %v2813_v31 = vld [vmem:[#allocation7 + $0x160] ss:$8 sps:$4 sm:$0xff]  }
 0x113   :  { %1543 = vmatpush1.bf16.msra.mxu1 %v2714_v32  ;;  %v2818_v32 = vld [vmem:[#allocation7 + $0x174] ss:$8 sps:$4 sm:$0xff]  }
 0x114   :  { %1544 = vmatprep.subr.bf16.mxu1 %v2719_v53  ;;  %v2816_v53 = vld [vmem:[#allocation7 + $0x170] ss:$8 sps:$4 sm:$0xff]  }
 0x117   :  { %1545 = vmatpush1.bf16.msra.mxu1 %v2717_v33  ;;  %v2821_v33 = vld [vmem:[#allocation7 + $0x184] ss:$8 sps:$4 sm:$0xff]  }
 0x118   :  { %1546 = vmatprep.subr.bf16.mxu1 %v2722_v34  ;;  %v2819_v34 = vld [vmem:[#allocation7 + $0x180] ss:$8 sps:$4 sm:$0xff]  }
 0x11b   :  { %1547 = vmatpush1.bf16.msra.mxu1 %v2720_v35  ;;  %v2824_v35 = vld [vmem:[#allocation7 + $0x194] ss:$8 sps:$4 sm:$0xff]  }
 0x11c   :  { %1548 = vmatprep.subr.bf16.mxu1 %v2725_v37  ;;  %v2822_v37 = vld [vmem:[#allocation7 + $0x190] ss:$8 sps:$4 sm:$0xff]  }
 0x11f   :  { %1549 = vmatpush1.bf16.msra.mxu1 %v2723_v39  ;;  %v2825_v39 = vld [vmem:[#allocation7 + $0x1a0] ss:$8 sps:$4 sm:$0xff]  }
 0x120   :  { %1550 = vmatprep.subr.bf16.mxu1 %v2728_v41  ;;  %v2828_v41 = vld [vmem:[#allocation7 + $0x1b0] ss:$8 sps:$4 sm:$0xff]  }
 0x123   :  { %1551 = vmatpush1.bf16.msra.mxu1 %v2726_v43  ;;  %v2831_v43 = vld [vmem:[#allocation7 + $0x1c0] ss:$8 sps:$4 sm:$0xff]  }
 0x124   :  { %1552 = vmatprep.subr.bf16.mxu1 %v2731_v45  ;;  %v2834_v45 = vld [vmem:[#allocation7 + $0x1d0] ss:$8 sps:$4 sm:$0xff]  }
 0x127   :  { %1553 = vmatpush1.bf16.msra.mxu1 %v2729_v46  ;;  %v2839_v46 = vld [vmem:[#allocation7 + $0x1e4] ss:$8 sps:$4 sm:$0xff]  }
 0x128   :  { %1554 = vmatprep.subr.bf16.mxu1 %v2734_v47  ;;  %v2837_v47 = vld [vmem:[#allocation7 + $0x1e0] ss:$8 sps:$4 sm:$0xff]  }
 0x12b   :  { %1555 = vmatpush1.bf16.msra.mxu1 %v2732_v49  ;;  %v2840_v49 = vld [vmem:[#allocation7 + $0x1f0] ss:$8 sps:$4 sm:$0xff]  }
 0x12c   :  { %1556 = vmatprep.subr.bf16.mxu1 %v2737_v50  ;;  %v290_v50 = vsub.s32 2, %v3044_v0 }
 0x12f   :  { %1557 = vmatpush1.bf16.msra.mxu1 %v2735_v51  ;;  %v294_v51 = vsub.s32 3, %v3044_v0 }
 0x130   :  { %1558 = vmatprep.subr.bf16.mxu1 %v2740_v52 }
 0x133   :  { %1559 = vmatpush1.bf16.msra.mxu1 %v2738_v54 }
 0x134   :  { %1560 = vmatprep.subr.bf16.mxu1 %v2743_v55 }
 0x137   :  { %1561 = vmatpush1.bf16.msra.mxu1 %v2741_v56 }
 0x138   :  { %1571 = vmatprep.subr.bf16.mxu1 %v2746_v57 }
 0x13a   :  { %1563 = vmatmul.mubr.bf16.vlgmr.msra.gmra.mrb[4].mxu1 %v3028_v17  ;;  %v3052_v17 = vld [vmem:[%s3080_s2] sm:$0xf] }
 0x13b   :  { %1572 = vmatpush1.bf16.msra.mxu1 %v2744_v58  ;;  %1603 = vmatprep.mubr.bf16.mxu1 %v2932_v23  ;;  %v3055_v23 = vsub.s32 1, %v3044_v0  ;;  %v291_v52 = vrot.slane %v3052_v17, %v290_v50  ;;  %v295_v54 = vrot.slane %v3052_v17, %v294_v51  ;;  %v1688_v0 = vld [vmem:[%s3082_s4] sm:$0x3] }
 0x13d   :  { %v287_v2 = vrot.slane %v3052_v17, %v3055_v23 }
 0x146   :  { %2347 = vmatmul.mubr.msk.bf16.vlgmr.msra.gmra.mrb[4].mxu1 %vm1280_vm0, %v3034_v28  ;;  %v283_v28 = vrot.slane %v3052_v17, %v3047_v1  ;;  %v1693_v17 = vrot.slane %v1688_v0, %v3047_v1 }
 0x14d   :  { %v1318_v59 = vpop.f32.mrb[0].mxu1 }
 0x14e   :  { %v1320_v60 = vpop.f32.mrb[1].mxu1  ;;  %v1319_v3 = vadd.f32 %v1318_v59, %v283_v28 }
 0x14f   :  { %v1322_v61 = vpop.f32.mrb[2].mxu1  ;;  %v1321_v4 = vadd.f32 %v1320_v60, %v287_v2 }
 0x150   :  { %v1323_v62 = vpop.f32.mrb[3].mxu1 }
 0x19a   :  { %v1441_v5 = vpop.f32.mrb[0].mxu0 }
 0x19b   :  { %v2414_v6 = vadd.f32 %v1441_v5, %v1319_v3  ;;  %v1443_v7 = vpop.f32.mrb[1].mxu0 }
 0x19c   :  { %v2416_v8 = vadd.f32 %v1443_v7, %v1321_v4  ;;  %v1445_v10 = vpop.f32.mrb[2].mxu0  ;;  %v1697_v4 = vrot.slane %v1688_v0, %v3055_v23 }
 0x19d   :  { %v1612_v11 = vmul.f32 0.2, %v2414_v6  ;;  %v1446_v13 = vpop.f32.mrb[3].mxu0 }
 0x19e   :  { %v1613_v14 = vmul.f32 0.2, %v2416_v8 }
 0x19f   :  { %v1616_v15 = vmax.f32 %v2414_v6, %v1612_v11 }
 0x1a0   :  { %v1617_v16 = vmax.f32 %v2416_v8, %v1613_v14 }
 0x1a1   :  { %v1620_v20 = vpack.c.bf16 %v1616_v15, %v1616_v15 }
 0x1a2   :  { %v1621_v18 = vpack.c.bf16 %v1617_v16, %v1617_v16 }
 0x1a4   :  { %2052 = vmatprep.mubr.bf16.mxu0 %v1621_v18 }
 0x1a5   :  { %2053 = vmatmul.mubr.bf16.vlgmr.msra.gmra.mrb[4].mxu0 %v1620_v20 }
 0x1a6   :  { %2062 = vmatpush1.bf16.msra.mxu0 %v2795_v19 }
 0x1a7   :  { %2063 = vmatprep.subr.bf16.mxu0 %v2800_v21 }
 0x1aa   :  { %2064 = vmatpush1.bf16.msra.mxu0 %v2798_v22  ;;  %v2112_v22 = vld [vmem:[%s3083_s5] sm:$0x3] }
 0x1ab   :  { %2065 = vmatprep.subr.bf16.mxu0 %v2803_v24  ;;  %v2117_v24 = vrot.slane %v2112_v22, %v3047_v1 }
 0x1ae   :  { %2066 = vmatpush1.bf16.msra.mxu0 %v2801_v25  ;;  %v2121_v25 = vrot.slane %v2112_v22, %v3055_v23 }
 0x1af   :  { %2067 = vmatprep.subr.bf16.mxu0 %v2806_v26 }
 0x1b2   :  { %2068 = vmatpush1.bf16.msra.mxu0 %v2804_v12 }
 0x1b3   :  { %2069 = vmatprep.subr.bf16.mxu0 %v2809_v27 }
 0x1b6   :  { %2070 = vmatpush1.bf16.msra.mxu0 %v2807_v36 }
 0x1b7   :  { %2071 = vmatprep.subr.bf16.mxu0 %v2812_v29 }
 0x1ba   :  { %2072 = vmatpush1.bf16.msra.mxu0 %v2810_v9  ;;  %v2412_v9 = vld [vmem:[#allocation2] ss:$0 sm:$0xff] }
 0x1bb   :  { %2073 = vmatprep.subr.bf16.mxu0 %v2815_v30 }
 0x1be   :  { %2074 = vmatpush1.bf16.msra.mxu0 %v2813_v31 }
 0x1bf   :  { %2075 = vmatprep.subr.bf16.mxu0 %v2818_v32 }
 0x1c2   :  { %2076 = vmatpush1.bf16.msra.mxu0 %v2816_v53 }
 0x1c3   :  { %2077 = vmatprep.subr.bf16.mxu0 %v2821_v33 }
 0x1c6   :  { %2078 = vmatpush1.bf16.msra.mxu0 %v2819_v34 }
 0x1c7   :  { %2079 = vmatprep.subr.bf16.mxu0 %v2824_v35 }
 0x1ca   :  { %2080 = vmatpush1.bf16.msra.mxu0 %v2822_v37 }
 0x1cb   :  { %2081 = vmatprep.subr.bf16.mxu0 %v2827_v38 }
 0x1ce   :  { %2082 = vmatpush1.bf16.msra.mxu0 %v2825_v39 }
 0x1cf   :  { %2083 = vmatprep.subr.bf16.mxu0 %v2830_v40 }
 0x1d2   :  { %2084 = vmatpush1.bf16.msra.mxu0 %v2828_v41 }
 0x1d3   :  { %2085 = vmatprep.subr.bf16.mxu0 %v2833_v42 }
 0x1d6   :  { %2086 = vmatpush1.bf16.msra.mxu0 %v2831_v43 }
 0x1d7   :  { %2087 = vmatprep.subr.bf16.mxu0 %v2836_v44 }
 0x1da   :  { %2088 = vmatpush1.bf16.msra.mxu0 %v2834_v45 }
 0x1db   :  { %2089 = vmatprep.subr.bf16.mxu0 %v2839_v46 }
 0x1de   :  { %2090 = vmatpush1.bf16.msra.mxu0 %v2837_v47 }
 0x1df   :  { %2091 = vmatprep.subr.bf16.mxu0 %v2842_v48 }
 0x1e2   :  { %2092 = vmatpush1.bf16.msra.mxu0 %v2840_v49 }
 0x219   :  { %v1605_v55 = vpop.f32.mrb[4].mxu1 }
 0x21a   :  { %v2417_v56 = vadd.f32 %v1605_v55, %v291_v52  ;;  %v1607_v57 = vpop.f32.mrb[5].mxu1 }
 0x21b   :  { %v2418_v58 = vadd.f32 %v1607_v57, %v295_v54  ;;  %v1609_v59 = vpop.f32.mrb[6].mxu1 }
 0x21c   :  { %v1614_v60 = vmul.f32 0.2, %v2417_v56  ;;  %v1610_v61 = vpop.f32.mrb[7].mxu1 }
 0x21d   :  { %v1615_v62 = vmul.f32 0.2, %v2418_v58 }
 0x21e   :  { %v1618_v63 = vmax.f32 %v2417_v56, %v1614_v60 }
 0x21f   :  { %v1619_v28 = vmax.f32 %v2418_v58, %v1615_v62 }
 0x220   :  { %v1622_v3 = vpack.c.bf16 %v1618_v63, %v1618_v63 }
 0x221   :  { %v1623_v2 = vpack.c.bf16 %v1619_v28, %v1619_v28 }
 0x223   :  { %2093 = vmatprep.mubr.bf16.mxu0 %v1623_v2 }
 0x224   :  { %2094 = vmatmul.mubr.bf16.vlgmr.msra.gmra.mrb[4].mxu0 %v1622_v3 }
 0x2f7   :  { %v2095_v5 = vpop.f32.mrb[4].mxu0 }
 0x2f8   :  { %v2419_v6 = vadd.f32 %v2095_v5, %v1693_v17  ;;  %v2097_v7 = vpop.f32.mrb[5].mxu0 }
 0x2f9   :  { %v2420_v8 = vadd.f32 %v2097_v7, %v1697_v4  ;;  %v2099_v10 = vpop.f32.mrb[6].mxu0 }
 0x2fa   :  { %v2102_v11 = vsub.f32 0.0, %v2419_v6  ;;  %v2100_v13 = vpop.f32.mrb[7].mxu0 }
 0x2fb   :  { %v2103_v14 = vsub.f32 0.0, %v2420_v8 }
 0x2fc   :  { %v2104_v15 = vmul.f32 1.442695, %v2102_v11 }
 0x2fd   :  { %v2106_v16 = vmul.f32 1.442695, %v2103_v14 }
 0x2fe   :  { %2843 = vpow2.f32 %v2104_v15 }
 0x2ff   :  { %2845 = vpow2.f32 %v2106_v16 }
 0x308   :  { %v2844_v18 = vpop.eup %2843 }
 0x309   :  { %v2846_v19 = vpop.eup %2845  ;;  %v2108_v20 = vadd.f32 1.0, %v2844_v18 }
 0x30a   :  { %v2109_v21 = vadd.f32 1.0, %v2846_v19 }
 0x30b   :  { %2847 = vrcp.f32 %v2108_v20 }
 0x30c   :  { %2849 = vrcp.f32 %v2109_v21 }
 0x315   :  { %v2848_v26 = vpop.eup %2847 }
 0x316   :  { %v2850_v12 = vpop.eup %2849  ;;  %v2124_v27 = vmul.f32 %v2848_v26, %v2117_v24 }
 0x317   :  { %v2125_v36 = vmul.f32 %v2850_v12, %v2121_v25 }
 0x319   :  { %v2126_v29 = vadd.f32 %v2125_v36, %v2124_v27 }
 0x31b   :  { %2127 = vadd.xlane.f32.xlu0 %v2126_v29 }
 0x3a8   :  { %v2128_v30 = vpop.xlane.xlu0 %2127 }
 0x3a9   :  { %v2136_v31 = vadd.f32 %v2412_v9, %v2128_v30 }
 0x3ab   :  { %v2137_v32 = vsub.f32 0.0, %v2136_v31 }
 0x3ad   :  { %v2138_v53 = vmul.f32 1.442695, %v2137_v32 }
 0x3af   :  { %2851 = vpow2.f32 %v2138_v53 }
 0x3b9   :  { %v2852_v33 = vpop.eup %2851 }
 0x3ba   :  { %v2140_v34 = vadd.f32 1.0, %v2852_v33 }
 0x3bc   :  { %2853 = vrcp.f32 %v2140_v34 }
 0x3c6   :  { %v2854_v35 = vpop.eup %2853 }
 0x3c7   :  { %2143 = vst.msk [vmem:[%s3085_s7] sm:$0xff] %vm2142_vm1, %v2854_v35 }
 0x3c8   :  { %2148 = vsyncpa [#allocation4], 1 }
 0x3c9   :  { %2149 = vsyncpa [#allocation6], 1 }

</bundles_post_ra>
